<compile_context>
chip_gen: v6e
topology: v6e:2x2x1
jax: 0.10.0
libtpu: 0.0.40
codegen_flags: <defaults>
</compile_context>

<pallas_src>
import jax
import jax.numpy as jnp
from jax.experimental import pallas as pl
from jax.experimental.pallas import tpu as pltpu


def _mol_feat_embed_kernel(emb_ref, feat_ref, out_ref):
    # emb_ref:  (TR, TH) embeddings
    # feat_ref: (TR, 1)  float32 per-row scale, already mask-folded
    # out_ref:  (TR, TH) promoted output dtype
    emb = emb_ref[...].astype(jnp.float32)
    feat = feat_ref[...]                       # (TR, 1) broadcasts over lanes
    out_ref[...] = (emb * feat).astype(out_ref.dtype)


def _round_up(x, m):
    return (x + m - 1) // m * m


def _vmem_capacity_bytes():
    try:
        info = pltpu.get_tpu_info()
        return int(getattr(info, "vmem_capacity_bytes", 64 << 20))
    except Exception:
        return 64 << 20  # conservative fallback (v7x per-core VMEM)


def mol_feature_embedder(input_embeddings, mol_feat_mask, mol_features):
    """input_embeddings: [B, S, H] float; mol_feat_mask: [B, S] bool;
    mol_features: [B, S] float.  Returns [B, S, H] in the promoted dtype."""
    B, S, H = input_embeddings.shape
    rows = B * S
    out_dtype = jnp.promote_types(input_embeddings.dtype, mol_features.dtype)

    emb2d = input_embeddings.reshape(rows, H)
    # Fold the mask into the per-row scale (tiny [B, S] op) -> single side input.
    feat2d = (
        jnp.where(mol_feat_mask, mol_features, 0)
        .astype(jnp.float32)
        .reshape(rows, 1)
    )

    emb_bytes = jnp.dtype(input_embeddings.dtype).itemsize
    out_bytes = jnp.dtype(out_dtype).itemsize

    # Sublane packing: 8 rows per vreg for 4-byte, 16 for 2-byte, 32 for 1-byte.
    sub = 8 * max(1, 4 // max(1, min(emb_bytes, out_bytes, 4)))

    # ---- tile selection -----------------------------------------------------
    vmem_cap = _vmem_capacity_bytes()
    # Double-buffered in+out+feat tiles must fit comfortably on every gen
    # (v7x has only 64 MiB physical VMEM per core; v5e/v6e have 128 MiB).
    buf_budget = min(48 << 20, vmem_cap // 2)

    # Hidden (lane) tile: keep full H; only split when H is a multiple of 128
    # and so large that even a minimal row tile would blow the budget.
    th = H
    if H % 128 == 0:
        while th % 256 == 0 and 2 * sub * th * (emb_bytes + out_bytes) > buf_budget:
            th //= 2

    per_row_bytes = th * (emb_bytes + out_bytes) + 4  # in + out + f32 feat
    max_tr = max(1, buf_budget // (2 * per_row_bytes))  # x2: double buffering

    if max_tr >= rows:
        tr = _round_up(rows, sub)
    else:
        tr = max(sub, (max_tr // sub) * sub)

    padded_rows = _round_up(rows, tr)
    if padded_rows != rows:
        pad = padded_rows - rows
        emb2d = jnp.pad(emb2d, ((0, pad), (0, 0)))
        feat2d = jnp.pad(feat2d, ((0, pad), (0, 0)))

    grid = (padded_rows // tr, H // th)

    # Raise the scoped-VMEM limit so the big tiles are accepted, with headroom.
    needed = 2 * tr * per_row_bytes + (2 << 20)
    vmem_limit = int(min(vmem_cap * 0.85, max(needed, 32 << 20)))

    out2d = pl.pallas_call(
        _mol_feat_embed_kernel,
        out_shape=jax.ShapeDtypeStruct((padded_rows, H), out_dtype),
        grid_spec=pltpu.PrefetchScalarGridSpec(
            num_scalar_prefetch=0,
            grid=grid,
            in_specs=[
                pl.BlockSpec((tr, th), lambda i, j: (i, j)),
                pl.BlockSpec((tr, 1), lambda i, j: (i, 0)),
            ],
            out_specs=pl.BlockSpec((tr, th), lambda i, j: (i, j)),
        ),
        compiler_params=pltpu.CompilerParams(
            dimension_semantics=("parallel", "parallel"),
            vmem_limit_bytes=vmem_limit,
        ),
    )(emb2d, feat2d)

    if padded_rows != rows:
        out2d = out2d[:rows]
    return out2d.reshape(B, S, H)


def _reference(input_embeddings, mol_feat_mask, mol_features):
    scaled = input_embeddings * mol_features[..., None]
    return jnp.where(mol_feat_mask[..., None], scaled, 0.0)


if __name__ == "__main__":
    key = jax.random.PRNGKey(0)
    k1, k2, k3 = jax.random.split(key, 3)

    B, S, H = 2, 8, 32
    input_embeddings = jax.random.normal(k1, (B, S, H), dtype=jnp.float32)
    mol_features = jax.random.normal(k2, (B, S), dtype=jnp.float32)
    mol_feat_mask = jax.random.bernoulli(k3, 0.5, (B, S))

    out = mol_feature_embedder(input_embeddings, mol_feat_mask, mol_features)
    out = jax.block_until_ready(out)

    ref = _reference(input_embeddings, mol_feat_mask, mol_features)
    assert out.shape == (B, S, H)
    assert out.dtype == ref.dtype
    assert jnp.allclose(out, ref, atol=1e-6, rtol=1e-6), "mismatch vs reference"

    print("KERNEL_OK")
</pallas_src>

<mosaic_0001>
module attributes {stable_mosaic.version = 11 : i64} {
  func.func @_mol_feat_embed_kernel(%arg0: i32, %arg1: i32, %arg2: memref<16x32xf32, #tpu.memory_space<vmem>>, %arg3: memref<16x1xf32, #tpu.memory_space<vmem>>, %arg4: memref<16x32xf32, #tpu.memory_space<vmem>>) attributes {dimension_semantics = [#tpu.dimension_semantics<parallel>, #tpu.dimension_semantics<parallel>], iteration_bounds = array<i64: 1, 1>, scalar_prefetch = 0 : i64, scratch_operands = 0 : i64, tpu.core_type = #tpu.core_type<tc>, window_params = [{transform_indices = @transform_0, window_bounds = array<i64: 16, 32>}, {transform_indices = @transform_1, window_bounds = array<i64: 16, 1>}, {transform_indices = @transform_2, window_bounds = array<i64: 16, 32>}]} {
    %c0 = arith.constant 0 : index
    %c0_0 = arith.constant 0 : index
    %0 = vector.load %arg2[%c0, %c0_0] : memref<16x32xf32, #tpu.memory_space<vmem>>, vector<16x32xf32>
    %c0_1 = arith.constant 0 : index
    %c0_2 = arith.constant 0 : index
    %1 = vector.load %arg3[%c0_1, %c0_2] : memref<16x1xf32, #tpu.memory_space<vmem>>, vector<16x1xf32>
    %2 = vector.broadcast %1 : vector<16x1xf32> to vector<16x32xf32>
    %3 = arith.mulf %0, %2 : vector<16x32xf32>
    %c0_3 = arith.constant 0 : index
    %c0_4 = arith.constant 0 : index
    %4 = vector.load %arg4[%c0_3, %c0_4] : memref<16x32xf32, #tpu.memory_space<vmem>>, vector<16x32xf32>
    tpu.vector_store %arg4[%c0_3, %c0_4], %3 {strides = array<i32>} : memref<16x32xf32, #tpu.memory_space<vmem>>, vector<16x32xf32>,
    return
  }
  func.func @transform_0(%arg0: i32, %arg1: i32) -> (i32, i32) {
    %c0_i32 = arith.constant 0 : i32
    return %arg0, %arg1 : i32, i32
  }
  func.func @transform_1(%arg0: i32, %arg1: i32) -> (i32, i32) {
    %c0_i32 = arith.constant 0 : i32
    %c0_i32_0 = arith.constant 0 : i32
    return %arg0, %c0_i32 : i32, i32
  }
  func.func @transform_2(%arg0: i32, %arg1: i32) -> (i32, i32) {
    %c0_i32 = arith.constant 0 : i32
    return %arg0, %arg1 : i32, i32
  }
}

</mosaic_0001>

<bundles_post_ra>
// kernel: tpu_custom_call.1
= control target key start
LH: loop header
LB: loop body
LE: loop exit
PB: predicated region body
PF: predicated region fallthrough
CT: control target
= control target key end

     0   :  { %v74_v1 = vmov 0   ;;  %s108_s0 = inlined_call_operand.vmem [shape: f32[16,32], index: 0, kind: input, shape index: {}]   ;;  %s109_s1 = inlined_call_operand.vmem [shape: f32[16,1], index: 1, kind: input, shape index: {}]   ;;  %s110_s2 = inlined_call_operand.hbm [shape: f32[16,32], index: 2, kind: output, shape index: {}]  }
   0x1   :  { %v14_v0 = vld [vmem:[%s109_s1] sm:$0xff]  ;;  %51 = vset.pattern.permute.xlu0 %v74_v1 }
   0x2   :  { %7 = vsyncpa [#allocation3], 0  ;;  %18 = vperm.xlu0 %51, %v14_v0   ;;  %v15_v2 = vld [vmem:[%s109_s1 + $0x8] sm:$0xff]  ;;  %v12_v3 = vld [vmem:[%s108_s0] sm:$0xff]  ;;  %vm28_vm0 = vcmask 261120   ;;  %s75_s15 = smov [#allocation2]  }
   0x3   :  { %s36_s16 = sshll.u32 %s75_s15, 4  ;;  %v13_v6 = vld [vmem:[%s108_s0 + $0x8] sm:$0xff]  ;;  %s37_s16 = int_to_ptr.vmem [resolvable:$true] %s36_s16 }
   0x4   :  { %s52_s1 = scalar_lea.vmem %s37_s16, 256  ;;  %p57_p1 = scmp.lt.s32.totalorder %s37_s16, %s37_s16 }
   0x5   :  { %p53_p0 = scmp.ne.s32.totalorder %s37_s16, %s52_s1  ;;  %p58_p2 = scmp.lt.s32.totalorder %s52_s1, %s52_s1 }
   0x6   :  { %23 = vperm.xlu0 %51, %v15_v2  }
   0x7   :  { %p59_p3 = por %p58_p2, %p57_p1 }
   0x9   :  { %p60_p4 = pnand %p59_p3, %p53_p0 }
  0x7d   :  { %v19_v4 = vpop.permute.xlu0 %18 }
  0x7e   :  { %v26_v5 = vmul.f32 %v19_v4, %v12_v3 }
  0x80   :  { %29 = vst.msk [vmem:[#allocation2] sm:$0xff] %vm28_vm0, %v26_v5 }
  0x81   :  { %v24_v7 = vpop.permute.xlu0 %23 }
  0x82   :  { %v27_v8 = vmul.f32 %v24_v7, %v13_v6 }
  0x84   :  { %30 = vst.msk [vmem:[#allocation2 + $0x8] sm:$0xff] %vm28_vm0, %v27_v8 }
  0x85   :  { %63 = shalt.err (!%p60_p4)
}
  0x86   :  { %s76_s19 = smov 128   ;;  %s77_s20 = smov 8  }
  0x87   :  { %42 = dma.vmem_to_hbm [thread:$0]  %s37_s16, 256, %s110_s2, [#allocation3], %s76_s19, %s76_s19, %s77_s20  }
  0x88   :  { %72 = dma.done.wait [#allocation3], 256  }
  0x89   :  { %73 = vsyncadd [#allocation3], 4294967040 }
  0x8a   :  { %46 = vsyncpa [#allocation3], 1 }

</bundles_post_ra>
